<compile_context>
chip_gen: v5e
topology: v5e:2x2
jax: 0.10.0
libtpu: 0.0.40
codegen_flags: <defaults>
</compile_context>

<pallas_src>
import jax
import jax.numpy as jnp
from jax.experimental import pallas as pl
from jax.experimental.pallas import tpu as pltpu


def _round_up(n, m):
    return ((n + m - 1) // m) * m


def _scale_shift_kernel(w_ref, b_ref, x_ref, o_ref):
    # w_ref, b_ref: (1,) scalars in SMEM (parameter dtype, e.g. f32).
    # x_ref, o_ref: (block_rows, L) tiles in VMEM.
    cdt = o_ref.dtype                       # promoted compute/output dtype
    w = w_ref[0].astype(cdt)
    b = b_ref[0].astype(cdt)
    o_ref[...] = x_ref[...].astype(cdt) * w + b


def _launch(x2d, weight, bias, out_dtype, block_rows, total_elems):
    rows, lane = x2d.shape
    grid = pl.cdiv(rows, block_rows)
    bytes_accessed = total_elems * (jnp.dtype(x2d.dtype).itemsize
                                    + jnp.dtype(out_dtype).itemsize)
    return pl.pallas_call(
        _scale_shift_kernel,
        out_shape=jax.ShapeDtypeStruct((rows, lane), out_dtype),
        grid=(grid,),
        in_specs=[
            pl.BlockSpec(memory_space=pltpu.MemorySpace.SMEM),   # weight (1,)
            pl.BlockSpec(memory_space=pltpu.MemorySpace.SMEM),   # bias   (1,)
            pl.BlockSpec((block_rows, lane), lambda i: (i, 0)),
        ],
        out_specs=pl.BlockSpec((block_rows, lane), lambda i: (i, 0)),
        compiler_params=pltpu.CompilerParams(
            dimension_semantics=("parallel",),
            vmem_limit_bytes=32 * 1024 * 1024),
        cost_estimate=pl.CostEstimate(
            flops=2 * total_elems,
            transcendentals=0,
            bytes_accessed=bytes_accessed),
    )(weight, bias, x2d)


def scale_and_shift(x, weight, bias, *, target_block_bytes=4 * 1024 * 1024):
    """y = weight * x + bias with scalar weight/bias, any input shape.

    Zero host-side padding / slicing: reshapes are contiguous collapses and the
    ragged row tail (if any) is handled by Pallas partial-block masking.
    """
    orig_shape = x.shape
    T = int(x.size)

    weight = jnp.asarray(weight).reshape(1)
    bias = jnp.asarray(bias).reshape(1)
    # PyTorch type promotion: f32 parameters with bf16 input -> f32 result.
    out_dtype = jnp.promote_types(x.dtype,
                                  jnp.promote_types(weight.dtype, bias.dtype))

    if T == 0:
        return jnp.zeros(orig_shape, out_dtype)

    itemsize = max(jnp.dtype(x.dtype).itemsize, jnp.dtype(out_dtype).itemsize)

    # Fast path: widest lane count that divides T exactly -> free reshape,
    # fully lane-dense unmasked loads/stores.
    lane = None
    for cand in (512, 256, 128):
        if T % cand == 0:
            lane = cand
            break

    if lane is not None:
        total_rows = T // lane
        x2d = x.reshape(total_rows, lane)
    else:
        # Ragged fallback (still zero-copy): keep the trailing dim as the lane
        # axis; a block last-dim equal to the full array dim is always legal.
        if x.ndim >= 2:
            x2d = x.reshape(-1, x.shape[-1])
        else:
            x2d = x.reshape(-1, 1)
        total_rows, lane = x2d.shape

    if total_rows <= 32:
        # Tiny input: single full-extent block (rows == full dim is legal for
        # any dtype), grid == 1.
        block_rows = total_rows
    else:
        # ~4 MiB blocks amortize the ~0.35 us per-grid-step overhead; rows are
        # a multiple of 32 (packed min tile for all dtypes).  Capping at
        # ceil(rows/2) guarantees grid >= 2 so both v7x TensorCores get work.
        rows_target = max(32, target_block_bytes // (lane * itemsize))
        block_rows = min(rows_target,
                         _round_up(pl.cdiv(total_rows, 2), 32))

    out2d = _launch(x2d, weight, bias, out_dtype, block_rows, T)
    # Exact-size reshape back (no slicing -- x2d.size == T by construction).
    return out2d.reshape(orig_shape)


def scale_and_shift_ref(x, weight, bias):
    """Pure-JAX reference matching the PyTorch forward."""
    return weight * x + bias


if __name__ == "__main__":
    key = jax.random.PRNGKey(0)
    kx, kw = jax.random.split(key)

    # Primary test: shape consistent with the module's elementwise forward.
    x = jax.random.normal(kx, (2, 4, 16, 16), dtype=jnp.float32)
    weight = jax.random.uniform(kw, (1,), dtype=jnp.float32)   # nn.Parameter(torch.rand(1))
    bias = jnp.zeros((1,), dtype=jnp.float32)                  # nn.Parameter(torch.zeros(1))

    out = jax.block_until_ready(scale_and_shift(x, weight, bias))
    ref = scale_and_shift_ref(x, weight, bias)
    assert out.shape == x.shape and out.dtype == ref.dtype
    assert jnp.allclose(out, ref, atol=1e-6, rtol=1e-6)

    # Secondary test: lane-dense path with a ragged (partial) last row-block,
    # exercising the no-pad masked-tail path (40 rows -> blocks of 32 + 8).
    x2 = jax.random.normal(kx, (40, 512), dtype=jnp.float32)
    out2 = jax.block_until_ready(scale_and_shift(x2, weight, bias))
    assert jnp.allclose(out2, scale_and_shift_ref(x2, weight, bias),
                        atol=1e-6, rtol=1e-6)

    # Tertiary test: non-128-divisible element count -> zero-copy fallback path.
    x3 = jax.random.normal(kx, (3, 7, 5), dtype=jnp.float32)
    out3 = jax.block_until_ready(scale_and_shift(x3, weight, bias))
    assert out3.shape == x3.shape
    assert jnp.allclose(out3, scale_and_shift_ref(x3, weight, bias),
                        atol=1e-6, rtol=1e-6)

    print("KERNEL_OK")
</pallas_src>

<mosaic_0001>
module attributes {stable_mosaic.version = 11 : i64} {
  func.func @_scale_shift_kernel(%arg0: i32, %arg1: memref<1xf32, #tpu.memory_space<smem>>, %arg2: memref<1xf32, #tpu.memory_space<smem>>, %arg3: memref<4x512xf32, #tpu.memory_space<vmem>>, %arg4: memref<4x512xf32, #tpu.memory_space<vmem>>) attributes {dimension_semantics = [#tpu.dimension_semantics<parallel>], iteration_bounds = array<i64: 1>, scalar_prefetch = 0 : i64, scratch_operands = 0 : i64, tpu.core_type = #tpu.core_type<tc>, window_params = [{transform_indices = @transform_0, window_bounds = array<i64: 1>}, {transform_indices = @transform_1, window_bounds = array<i64: 1>}, {transform_indices = @transform_2, window_bounds = array<i64: 4, 512>}, {transform_indices = @transform_3, window_bounds = array<i64: 4, 512>}]} {
    %c0 = arith.constant 0 : index
    %0 = memref.load %arg1[%c0] : memref<1xf32, #tpu.memory_space<smem>>
    %c0_0 = arith.constant 0 : index
    %1 = memref.load %arg2[%c0_0] : memref<1xf32, #tpu.memory_space<smem>>
    %c0_1 = arith.constant 0 : index
    %c0_2 = arith.constant 0 : index
    %2 = vector.load %arg3[%c0_1, %c0_2] : memref<4x512xf32, #tpu.memory_space<vmem>>, vector<4x512xf32>
    %3 = vector.broadcast %0 : f32 to vector<4x512xf32>
    %4 = arith.mulf %2, %3 : vector<4x512xf32>
    %5 = vector.broadcast %1 : f32 to vector<4x512xf32>
    %6 = arith.addf %4, %5 : vector<4x512xf32>
    %c0_3 = arith.constant 0 : index
    %c0_4 = arith.constant 0 : index
    %7 = vector.load %arg4[%c0_3, %c0_4] : memref<4x512xf32, #tpu.memory_space<vmem>>, vector<4x512xf32>
    tpu.vector_store %arg4[%c0_3, %c0_4], %6 {strides = array<i32>} : memref<4x512xf32, #tpu.memory_space<vmem>>, vector<4x512xf32>,
    return
  }
  func.func @transform_0(%arg0: i32) -> i32 {
    %c0_i32 = arith.constant 0 : i32
    %c0_i32_0 = arith.constant 0 : i32
    return %c0_i32 : i32
  }
  func.func @transform_1(%arg0: i32) -> i32 {
    %c0_i32 = arith.constant 0 : i32
    %c0_i32_0 = arith.constant 0 : i32
    return %c0_i32 : i32
  }
  func.func @transform_2(%arg0: i32) -> (i32, i32) {
    %c0_i32 = arith.constant 0 : i32
    %c0_i32_0 = arith.constant 0 : i32
    return %arg0, %c0_i32 : i32, i32
  }
  func.func @transform_3(%arg0: i32) -> (i32, i32) {
    %c0_i32 = arith.constant 0 : i32
    %c0_i32_0 = arith.constant 0 : i32
    return %arg0, %c0_i32 : i32, i32
  }
}

</mosaic_0001>

<bundles_post_ra>
// kernel: tpu_custom_call.1
= control target key start
LH: loop header
LB: loop body
LE: loop exit
PB: predicated region body
PF: predicated region fallthrough
CT: control target
= control target key end

     0   :  { %10 = vsyncpa [#allocation5], 0  ;;  %s148_s0 = inlined_call_operand.<no memory space> [shape: f32[1], index: 0, kind: input, shape index: {}]   ;;  %s149_s1 = inlined_call_operand.<no memory space> [shape: f32[1], index: 1, kind: input, shape index: {}]   ;;  %s150_s2 = inlined_call_operand.hbm [shape: f32[4,512], index: 2, kind: input, shape index: {}]   ;;  %s151_s3 = inlined_call_operand.hbm [shape: f32[4,512], index: 3, kind: output, shape index: {}]  }
   0x1   :  { %11 = vsyncpa [#allocation6], 0  ;;  %s21_s14 = sshll.u32 %s150_s2, 4  ;;  %s114_s15 = smov [#allocation4]   ;;  %s22_s14 = int_to_ptr.hbm [resolvable:$true] %s21_s14 }
   0x2   :  { %s23_s16 = sshll.u32 %s114_s15, 4  ;;  %s24_s16 = int_to_ptr.vmem [resolvable:$true] %s23_s16 }
   0x3   :  { %26 = dma.hbm_to_vmem [thread:$0]  %s22_s14, 256, %s24_s16, [#allocation5]  }
   0x4   :  { %110 = dma.done.wait [#allocation5], 256  }
   0x5   :  { %111 = vsyncadd [#allocation5], 4294967040  ;;  %v35_v0 = vstv %s148_s0  ;;  %v33_v1 = vld [vmem:[#allocation4] sm:$0xff]  ;;  %v38_v2 = vstv %s149_s1  ;;  %v34_v3 = vld [vmem:[#allocation4 + $0x8] sm:$0xff]  ;;  %s115_s2 = smov [#allocation7]   ;;  %s50_s24 = sshll.u32 %s151_s3, 4  ;;  %s51_s24 = int_to_ptr.hbm [resolvable:$true] %s50_s24 }
   0x6   :  { %v36_v4 = vmul.f32 %v35_v0, %v33_v1  ;;  %v37_v5 = vmul.f32 %v35_v0, %v34_v3  ;;  %s48_s21 = sshll.u32 %s115_s2, 4  ;;  %s49_s21 = int_to_ptr.vmem [resolvable:$true] %s48_s21 }
   0x8   :  { %v39_v6 = vadd.f32 %v38_v2, %v36_v4  ;;  %v40_v7 = vadd.f32 %v38_v2, %v37_v5 }
   0xa   :  { %41 = vst [vmem:[#allocation7] sm:$0xff] %v39_v6 }
   0xb   :  { %42 = vst [vmem:[#allocation7 + $0x8] sm:$0xff] %v40_v7 }
   0xc   :  { %53 = dma.vmem_to_hbm [thread:$0]  %s49_s21, 256, %s51_s24, [#allocation6]  }
   0xd   :  { %112 = dma.done.wait [#allocation6], 256  }
   0xe   :  { %113 = vsyncadd [#allocation6], 4294967040 }
   0xf   :  { %58 = vsyncpa [#allocation5], 1 }
  0x10   :  { %59 = vsyncpa [#allocation6], 1 }

</bundles_post_ra>
